<compile_context>
chip_gen: v7x
topology: tpu7x:2x2x1
jax: 0.10.0
libtpu: 0.0.40
codegen_flags: <defaults>
</compile_context>

<pallas_src>
import functools
import math
from dataclasses import dataclass

import numpy as np
import jax
import jax.numpy as jnp
from jax.experimental import pallas as pl
from jax.experimental.pallas import tpu as pltpu

MASK_VALUE = -1e30
VMEM_LIMIT = 64 * 1024 * 1024


# ----------------------------------------------------------------------------- config
@dataclass
class VisionConfig:
    depth: int = 2
    hidden_size: int = 32
    num_heads: int = 4
    intermediate_size: int = 64
    out_hidden_size: int = 48
    in_channels: int = 3
    patch_size: int = 2
    temporal_patch_size: int = 2
    spatial_merge_size: int = 2
    window_size: int = 8
    fullatt_block_indexes: tuple = (1,)

    @property
    def head_dim(self):
        return self.hidden_size // self.num_heads

    @property
    def spatial_merge_unit(self):
        return self.spatial_merge_size * self.spatial_merge_size


# ----------------------------------------------------------------------------- helpers
def _tile(dim, target, align):
    """Largest multiple of `align` that divides `dim` and is <= target; else the full dim."""
    if dim <= target:
        return dim
    t = (target // align) * align
    while t >= align:
        if dim % t == 0:
            return t
        t -= align
    return dim


def _cparams(*semantics):
    return pltpu.CompilerParams(dimension_semantics=semantics,
                                vmem_limit_bytes=VMEM_LIMIT)


def _rms(x, w, eps):
    var = jnp.mean(x * x, axis=-1, keepdims=True)
    return x * jax.lax.rsqrt(var + eps) * w


# ----------------------------------------------------------------------------- tiled linear (patch embed / merger)
def _linear_kernel(x_ref, w_ref, b_ref, o_ref, acc_ref):
    @pl.when(pl.program_id(2) == 0)
    def _():
        acc_ref[...] = jnp.zeros_like(acc_ref)

    acc_ref[...] += jnp.dot(x_ref[...].astype(jnp.bfloat16), w_ref[...],
                            preferred_element_type=jnp.float32)

    @pl.when(pl.program_id(2) == pl.num_programs(2) - 1)
    def _():
        o_ref[...] = (acc_ref[...] + b_ref[...]).astype(o_ref.dtype)


def linear_pallas(x, w, b):
    M, K = x.shape
    N = w.shape[1]
    tm = _tile(M, 256, 8)
    tn = _tile(N, 256, 128)
    tk = _tile(K, 512, 128)
    return pl.pallas_call(
        _linear_kernel,
        out_shape=jax.ShapeDtypeStruct((M, N), x.dtype),
        grid=(M // tm, N // tn, K // tk),
        in_specs=[
            pl.BlockSpec((tm, tk), lambda i, j, k: (i, k)),
            pl.BlockSpec((tk, tn), lambda i, j, k: (k, j)),
            pl.BlockSpec((1, tn), lambda i, j, k: (0, j)),
        ],
        out_specs=pl.BlockSpec((tm, tn), lambda i, j, k: (i, j)),
        scratch_shapes=[pltpu.VMEM((tm, tn), jnp.float32)],
        compiler_params=_cparams("parallel", "parallel", "arbitrary"),
    )(x, w.astype(jnp.bfloat16), b)


# ----------------------------------------------------------------------------- row-tiled RMSNorm (merger ln_q)
def _rmsnorm_kernel(x_ref, w_ref, o_ref, *, eps):
    o_ref[...] = _rms(x_ref[...].astype(jnp.float32), w_ref[...], eps).astype(o_ref.dtype)


def rmsnorm_pallas(x, w, eps=1e-6):
    S, C = x.shape
    tm = _tile(S, 512, 8)
    return pl.pallas_call(
        functools.partial(_rmsnorm_kernel, eps=eps),
        out_shape=jax.ShapeDtypeStruct((S, C), x.dtype),
        grid=(S // tm,),
        in_specs=[pl.BlockSpec((tm, C), lambda i: (i, 0)),
                  pl.BlockSpec((1, C), lambda i: (0, 0))],
        out_specs=pl.BlockSpec((tm, C), lambda i: (i, 0)),
        compiler_params=_cparams("parallel"),
    )(x, w)


# ----------------------------------------------------------------------------- fused norm1 + QKV + RoPE
def _qkv_rope_kernel(x_ref, nw_ref, w_ref, b_ref, cos_ref, sin_ref,
                     q_ref, k_ref, v_ref, *, num_heads, head_dim, eps):
    hd = num_heads * head_dim
    half = head_dim // 2

    xn = _rms(x_ref[...].astype(jnp.float32), nw_ref[...], eps)
    qkv = jnp.dot(xn.astype(jnp.bfloat16), w_ref[...],
                  preferred_element_type=jnp.float32) + b_ref[...]
    q, k, v = qkv[:, :hd], qkv[:, hd:2 * hd], qkv[:, 2 * hd:]

    cos = cos_ref[...]
    sin = sin_ref[...]
    lane = jax.lax.broadcasted_iota(jnp.int32, q.shape, 1) % head_dim

    def rotate_half_flat(t):
        # per-head rotate_half on the flat (rows, H*D) layout via two XLU rolls + select
        fwd = pltpu.roll(t, hd - half, 1)   # t[:, j + half]  (within head, no cross-head leak used)
        bwd = pltpu.roll(t, half, 1)        # t[:, j - half]
        return jnp.where(lane < half, -fwd, bwd)

    q_ref[...] = (q * cos + rotate_half_flat(q) * sin).astype(q_ref.dtype)
    k_ref[...] = (k * cos + rotate_half_flat(k) * sin).astype(k_ref.dtype)
    v_ref[...] = v.astype(v_ref.dtype)


def qkv_rope_pallas(hidden, norm_w, qkv_w, qkv_b, cos_flat, sin_flat, cfg, eps=1e-6):
    S, C = hidden.shape
    hd = cfg.num_heads * cfg.head_dim
    tm = _tile(S, 256, 8)
    out = jax.ShapeDtypeStruct((S, hd), hidden.dtype)
    kern = functools.partial(_qkv_rope_kernel, num_heads=cfg.num_heads,
                             head_dim=cfg.head_dim, eps=eps)
    return pl.pallas_call(
        kern,
        out_shape=(out, out, out),
        grid=(S // tm,),
        in_specs=[
            pl.BlockSpec((tm, C), lambda i: (i, 0)),
            pl.BlockSpec((1, C), lambda i: (0, 0)),
            pl.BlockSpec((C, 3 * hd), lambda i: (0, 0)),
            pl.BlockSpec((1, 3 * hd), lambda i: (0, 0)),
            pl.BlockSpec((tm, hd), lambda i: (i, 0)),
            pl.BlockSpec((tm, hd), lambda i: (i, 0)),
        ],
        out_specs=(pl.BlockSpec((tm, hd), lambda i: (i, 0)),) * 3,
        compiler_params=_cparams("parallel"),
    )(hidden, norm_w, qkv_w.astype(jnp.bfloat16), qkv_b, cos_flat, sin_flat)


# ----------------------------------------------------------------------------- flash attention (segment-id mask)
def _flash_attn_kernel(segq_ref, segk_ref, q_ref, k_ref, v_ref, o_ref,
                       m_sc, l_sc, acc_sc, *, num_heads, head_dim, scale):
    kv = pl.program_id(1)

    @pl.when(kv == 0)
    def _():
        m_sc[...] = jnp.full(m_sc.shape, MASK_VALUE, m_sc.dtype)
        l_sc[...] = jnp.zeros(l_sc.shape, l_sc.dtype)
        acc_sc[...] = jnp.zeros(acc_sc.shape, acc_sc.dtype)

    mask = segq_ref[...] == segk_ref[...]          # (tq,1) == (1,tk) -> (tq,tk)
    maskf = mask.astype(jnp.float32)

    for h in range(num_heads):                     # static unroll over heads
        lo, hi = h * head_dim, (h + 1) * head_dim
        qh = q_ref[:, lo:hi].astype(jnp.bfloat16)
        kh = k_ref[:, lo:hi].astype(jnp.bfloat16)
        vh = v_ref[:, lo:hi].astype(jnp.bfloat16)

        s = jax.lax.dot_general(qh, kh, (((1,), (1,)), ((), ())),
                                preferred_element_type=jnp.float32) * scale
        s = jnp.where(mask, s, MASK_VALUE)

        m_prev = m_sc[h]                                            # (tq,1)
        m_new = jnp.maximum(m_prev, jnp.max(s, axis=-1, keepdims=True))
        alpha = jnp.exp(m_prev - m_new)
        p = jnp.exp(s - m_new) * maskf              # masked keys contribute exactly zero
        l_sc[h] = alpha * l_sc[h] + jnp.sum(p, axis=-1, keepdims=True)
        acc_sc[:, lo:hi] = alpha * acc_sc[:, lo:hi] + jnp.dot(
            p.astype(jnp.bfloat16), vh, preferred_element_type=jnp.float32)
        m_sc[h] = m_new

    @pl.when(kv == pl.num_programs(1) - 1)
    def _():
        tq = acc_sc.shape[0]
        inv_l = jnp.concatenate(
            [jnp.broadcast_to(pl.reciprocal(l_sc[h], approx=True), (tq, head_dim))
             for h in range(num_heads)], axis=-1)
        o_ref[...] = (acc_sc[...] * inv_l).astype(o_ref.dtype)


def flash_attention_pallas(q, k, v, seg_col, seg_row, cfg):
    S, hd = q.shape
    tq = _tile(S, 256, 8)
    tk = _tile(S, 512, 128)
    kern = functools.partial(_flash_attn_kernel, num_heads=cfg.num_heads,
                             head_dim=cfg.head_dim,
                             scale=1.0 / math.sqrt(cfg.head_dim))
    return pl.pallas_call(
        kern,
        out_shape=jax.ShapeDtypeStruct((S, hd), q.dtype),
        grid=(S // tq, S // tk),
        in_specs=[
            pl.BlockSpec((tq, 1), lambda qi, ki: (qi, 0)),
            pl.BlockSpec((1, tk), lambda qi, ki: (0, ki)),
            pl.BlockSpec((tq, hd), lambda qi, ki: (qi, 0)),
            pl.BlockSpec((tk, hd), lambda qi, ki: (ki, 0)),
            pl.BlockSpec((tk, hd), lambda qi, ki: (ki, 0)),
        ],
        out_specs=pl.BlockSpec((tq, hd), lambda qi, ki: (qi, 0)),
        scratch_shapes=[
            pltpu.VMEM((cfg.num_heads, tq, 1), jnp.float32),   # running max
            pltpu.VMEM((cfg.num_heads, tq, 1), jnp.float32),   # running sum
            pltpu.VMEM((tq, hd), jnp.float32),                 # lane-dense output accumulator
        ],
        compiler_params=_cparams("parallel", "arbitrary"),
    )(seg_col, seg_row, q, k, v)


# ----------------------------------------------------------------------------- fused proj + residual
def _proj_residual_kernel(a_ref, r_ref, w_ref, b_ref, o_ref):
    y = jnp.dot(a_ref[...].astype(jnp.bfloat16), w_ref[...],
                preferred_element_type=jnp.float32) + b_ref[...]
    o_ref[...] = (r_ref[...].astype(jnp.float32) + y).astype(o_ref.dtype)


def proj_residual_pallas(attn, residual, w, b):
    S, hd = attn.shape
    C = w.shape[1]
    tm = _tile(S, 256, 8)
    return pl.pallas_call(
        _proj_residual_kernel,
        out_shape=jax.ShapeDtypeStruct((S, C), residual.dtype),
        grid=(S // tm,),
        in_specs=[
            pl.BlockSpec((tm, hd), lambda i: (i, 0)),
            pl.BlockSpec((tm, C), lambda i: (i, 0)),
            pl.BlockSpec((hd, C), lambda i: (0, 0)),
            pl.BlockSpec((1, C), lambda i: (0, 0)),
        ],
        out_specs=pl.BlockSpec((tm, C), lambda i: (i, 0)),
        compiler_params=_cparams("parallel"),
    )(attn, residual, w.astype(jnp.bfloat16), b)


# ----------------------------------------------------------------------------- fused norm2 + SwiGLU MLP + residual
def _mlp_residual_kernel(x_ref, nw_ref, wg_ref, bg_ref, wu_ref, bu_ref, wd_ref, bd_ref,
                         o_ref, *, eps):
    x = x_ref[...].astype(jnp.float32)
    xn = _rms(x, nw_ref[...], eps).astype(jnp.bfloat16)
    g = jnp.dot(xn, wg_ref[...], preferred_element_type=jnp.float32) + bg_ref[...]
    u = jnp.dot(xn, wu_ref[...], preferred_element_type=jnp.float32) + bu_ref[...]
    h = g * pl.reciprocal(1.0 + jnp.exp(-g), approx=True) * u     # silu(g) * u
    y = jnp.dot(h.astype(jnp.bfloat16), wd_ref[...],
                preferred_element_type=jnp.float32) + bd_ref[...]
    o_ref[...] = (x + y).astype(o_ref.dtype)


def mlp_residual_pallas(hidden, norm_w, wg, bg, wu, bu, wd, bd, eps=1e-6):
    S, C = hidden.shape
    inter = wg.shape[1]
    tm = _tile(S, 256, 8)
    return pl.pallas_call(
        functools.partial(_mlp_residual_kernel, eps=eps),
        out_shape=jax.ShapeDtypeStruct((S, C), hidden.dtype),
        grid=(S // tm,),
        in_specs=[
            pl.BlockSpec((tm, C), lambda i: (i, 0)),
            pl.BlockSpec((1, C), lambda i: (0, 0)),
            pl.BlockSpec((C, inter), lambda i: (0, 0)),
            pl.BlockSpec((1, inter), lambda i: (0, 0)),
            pl.BlockSpec((C, inter), lambda i: (0, 0)),
            pl.BlockSpec((1, inter), lambda i: (0, 0)),
            pl.BlockSpec((inter, C), lambda i: (0, 0)),
            pl.BlockSpec((1, C), lambda i: (0, 0)),
        ],
        out_specs=pl.BlockSpec((tm, C), lambda i: (i, 0)),
        compiler_params=_cparams("parallel"),
    )(hidden, norm_w, wg.astype(jnp.bfloat16), bg, wu.astype(jnp.bfloat16), bu,
      wd.astype(jnp.bfloat16), bd)


# ----------------------------------------------------------------------------- host-side index helpers (static glue)
def rot_pos_emb_np(grid_thw, spatial_merge_size, rotary_dim):
    sms = spatial_merge_size
    pos_ids = []
    for t, h, w in grid_thw:
        hpos = np.broadcast_to(np.arange(h)[:, None], (h, w))
        hpos = hpos.reshape(h // sms, sms, w // sms, sms).transpose(0, 2, 1, 3).reshape(-1)
        wpos = np.broadcast_to(np.arange(w)[None, :], (h, w))
        wpos = wpos.reshape(h // sms, sms, w // sms, sms).transpose(0, 2, 1, 3).reshape(-1)
        pos_ids.append(np.tile(np.stack([hpos, wpos], axis=-1), (t, 1)))
    pos_ids = np.concatenate(pos_ids, axis=0)
    max_grid = int(grid_thw[:, 1:].max())
    inv_freq = 1.0 / (10000.0 ** (np.arange(0, rotary_dim, 2, dtype=np.float32) / rotary_dim))
    freqs = np.outer(np.arange(max_grid, dtype=np.float32), inv_freq)
    rpe = freqs[pos_ids]                               # (seq, 2, rotary_dim//2)
    return rpe.reshape(rpe.shape[0], -1)               # (seq, rotary_dim)


def get_window_index_np(grid_thw, cfg: VisionConfig):
    window_index, cu_window_seqlens = [], [0]
    window_index_id = 0
    vit_win = cfg.window_size // cfg.spatial_merge_size // cfg.patch_size
    for grid_t, grid_h, grid_w in grid_thw:
        llm_h, llm_w = grid_h // cfg.spatial_merge_size, grid_w // cfg.spatial_merge_size
        index = np.arange(grid_t * llm_h * llm_w).reshape(grid_t, llm_h, llm_w)
        pad_h = vit_win - llm_h % vit_win
        pad_w = vit_win - llm_w % vit_win
        nwh = (llm_h + pad_h) // vit_win
        nww = (llm_w + pad_w) // vit_win
        idx_p = np.full((grid_t, llm_h + pad_h, llm_w + pad_w), -100, dtype=np.int64)
        idx_p[:, :llm_h, :llm_w] = index
        idx_p = idx_p.reshape(grid_t, nwh, vit_win, nww, vit_win)
        idx_p = idx_p.transpose(0, 1, 3, 2, 4).reshape(grid_t, nwh * nww, vit_win, vit_win)
        seqlens = (idx_p != -100).sum(axis=(2, 3)).reshape(-1)
        idx_flat = idx_p.reshape(-1)
        idx_new = idx_flat[idx_flat != -100]
        window_index.append(idx_new + window_index_id)
        cu_tmp = np.cumsum(seqlens) * cfg.spatial_merge_unit + cu_window_seqlens[-1]
        cu_window_seqlens.extend(cu_tmp.tolist())
        window_index_id += int(grid_t * llm_h * llm_w)
    window_index = np.concatenate(window_index)
    cu = np.asarray(cu_window_seqlens, dtype=np.int32)
    keep = np.ones(len(cu), dtype=bool)
    keep[1:] = cu[1:] != cu[:-1]                       # unique_consecutive
    return window_index, cu[keep]


def seg_ids_np(cu, seq_len):
    seg = np.zeros(seq_len, dtype=np.int32)
    for i in range(1, len(cu)):
        seg[int(cu[i - 1]):int(cu[i])] = i
    return seg


# ----------------------------------------------------------------------------- model glue (JAX)
def vision_block(p, hidden, cos_flat, sin_flat, seg_col, seg_row, cfg: VisionConfig):
    q, k, v = qkv_rope_pallas(hidden, p["norm1_w"], p["qkv_w"], p["qkv_b"],
                              cos_flat, sin_flat, cfg)
    attn = flash_attention_pallas(q, k, v, seg_col, seg_row, cfg)
    hidden = proj_residual_pallas(attn, hidden, p["proj_w"], p["proj_b"])
    hidden = mlp_residual_pallas(hidden, p["norm2_w"], p["gate_w"], p["gate_b"],
                                 p["up_w"], p["up_b"], p["down_w"], p["down_b"])
    return hidden


def vision_transformer_forward(params, pixel_values, grid_thw, cfg: VisionConfig):
    # patch embed == Conv3d(stride=kernel, bias=False) == matmul on flattened patches
    hidden = linear_pallas(pixel_values, params["patch_w"], params["patch_b"])
    S = hidden.shape[0]

    rpe = rot_pos_emb_np(grid_thw, cfg.spatial_merge_size, cfg.head_dim // 2)
    window_index, cu_window = get_window_index_np(grid_thw, cfg)
    cu_full = np.concatenate(
        [[0], np.cumsum(np.repeat(grid_thw[:, 1] * grid_thw[:, 2], grid_thw[:, 0]))]
    ).astype(np.int32)

    smu = cfg.spatial_merge_unit
    num_groups = S // smu
    widx = jnp.asarray(window_index.astype(np.int32))

    hidden = hidden.reshape(num_groups, smu, -1)[widx].reshape(S, -1)
    rpe = rpe.reshape(num_groups, smu, -1)[window_index].reshape(S, -1)
    emb = np.concatenate([rpe, rpe], axis=-1)                        # (S, head_dim)
    cos_flat = jnp.asarray(np.tile(np.cos(emb), (1, cfg.num_heads)), jnp.float32)
    sin_flat = jnp.asarray(np.tile(np.sin(emb), (1, cfg.num_heads)), jnp.float32)

    seg_full = seg_ids_np(cu_full, S)
    seg_win = seg_ids_np(cu_window, S)
    segs = {
        "full": (jnp.asarray(seg_full.reshape(S, 1)), jnp.asarray(seg_full.reshape(1, S))),
        "win": (jnp.asarray(seg_win.reshape(S, 1)), jnp.asarray(seg_win.reshape(1, S))),
    }

    for layer_num, bp in enumerate(params["blocks"]):
        which = "full" if layer_num in cfg.fullatt_block_indexes else "win"
        seg_col, seg_row = segs[which]
        hidden = vision_block(bp, hidden, cos_flat, sin_flat, seg_col, seg_row, cfg)

    # merger: RMSNorm -> (free) reshape to merged groups -> Linear -> GELU(exact) -> Linear
    x = rmsnorm_pallas(hidden, params["lnq_w"])
    x = x.reshape(num_groups, cfg.hidden_size * smu)
    x = linear_pallas(x, params["mrg_w1"], params["mrg_b1"])
    x = jax.nn.gelu(x, approximate=False)   # TODO(synk): exact-erf GELU kept in XLA (erf lowering in Mosaic not guaranteed)
    x = linear_pallas(x, params["mrg_w2"], params["mrg_b2"])

    reverse_indices = np.argsort(window_index).astype(np.int32)
    return x[jnp.asarray(reverse_indices)]


# ----------------------------------------------------------------------------- parameter init
def init_params(cfg: VisionConfig, key):
    def nxt():
        nonlocal key
        key, sub = jax.random.split(key)
        return sub

    def lin(fan_in, fan_out, bias=True):
        w = jax.random.normal(nxt(), (fan_in, fan_out), jnp.float32) * 0.02
        b = (jax.random.normal(nxt(), (1, fan_out), jnp.float32) * 0.02
             if bias else jnp.zeros((1, fan_out), jnp.float32))
        return w, b

    patch_in = cfg.in_channels * cfg.temporal_patch_size * cfg.patch_size * cfg.patch_size
    patch_w, _ = lin(patch_in, cfg.hidden_size, bias=True)
    patch_b = jnp.zeros((1, cfg.hidden_size), jnp.float32)      # Conv3d(bias=False)

    blocks = []
    for _ in range(cfg.depth):
        qkv_w, qkv_b = lin(cfg.hidden_size, 3 * cfg.hidden_size)
        proj_w, proj_b = lin(cfg.hidden_size, cfg.hidden_size)
        gate_w, gate_b = lin(cfg.hidden_size, cfg.intermediate_size)
        up_w, up_b = lin(cfg.hidden_size, cfg.intermediate_size)
        down_w, down_b = lin(cfg.intermediate_size, cfg.hidden_size)
        blocks.append(dict(
            norm1_w=jnp.ones((1, cfg.hidden_size), jnp.float32),
            norm2_w=jnp.ones((1, cfg.hidden_size), jnp.float32),
            qkv_w=qkv_w, qkv_b=qkv_b, proj_w=proj_w, proj_b=proj_b,
            gate_w=gate_w, gate_b=gate_b, up_w=up_w, up_b=up_b,
            down_w=down_w, down_b=down_b,
        ))

    merged_dim = cfg.hidden_size * cfg.spatial_merge_unit
    mrg_w1, mrg_b1 = lin(merged_dim, merged_dim)
    mrg_w2, mrg_b2 = lin(merged_dim, cfg.out_hidden_size)

    return dict(
        patch_w=patch_w, patch_b=patch_b,
        blocks=blocks,
        lnq_w=jnp.ones((1, cfg.hidden_size), jnp.float32),
        mrg_w1=mrg_w1, mrg_b1=mrg_b1, mrg_w2=mrg_w2, mrg_b2=mrg_b2,
    )


# ----------------------------------------------------------------------------- main
if __name__ == "__main__":
    cfg = VisionConfig()
    key = jax.random.PRNGKey(0)
    k_params, k_pix = jax.random.split(key)

    params = init_params(cfg, k_params)

    grid_thw = np.array([[1, 8, 8]], dtype=np.int64)            # t=1, h=8, w=8 -> 64 patches
    seq_len = int((grid_thw[:, 0] * grid_thw[:, 1] * grid_thw[:, 2]).sum())
    patch_dim = cfg.in_channels * cfg.temporal_patch_size * cfg.patch_size * cfg.patch_size
    pixel_values = jax.random.normal(k_pix, (seq_len, patch_dim), jnp.float32)

    out = vision_transformer_forward(params, pixel_values, grid_thw, cfg)
    out = jax.block_until_ready(out)

    expected_rows = seq_len // cfg.spatial_merge_unit
    assert out.shape == (expected_rows, cfg.out_hidden_size), out.shape
    assert bool(jnp.all(jnp.isfinite(out)))
    print("KERNEL_OK")
</pallas_src>

<mosaic_0001>
module attributes {stable_mosaic.version = 11 : i64} {
  func.func @_linear_kernel(%arg0: i32, %arg1: i32, %arg2: i32, %arg3: memref<64x24xf32, #tpu.memory_space<vmem>>, %arg4: memref<24x32xbf16, #tpu.memory_space<vmem>>, %arg5: memref<1x32xf32, #tpu.memory_space<vmem>>, %arg6: memref<64x32xf32, #tpu.memory_space<vmem>>, %arg7: memref<64x32xf32, #tpu.memory_space<vmem>>) attributes {dimension_semantics = [#tpu.dimension_semantics<parallel>, #tpu.dimension_semantics<parallel>, #tpu.dimension_semantics<arbitrary>], iteration_bounds = array<i64: 1, 1, 1>, scalar_prefetch = 0 : i64, scratch_operands = 1 : i64, tpu.core_type = #tpu.core_type<tc>, window_params = [{transform_indices = @transform_0, window_bounds = array<i64: 64, 24>}, {transform_indices = @transform_1, window_bounds = array<i64: 24, 32>}, {transform_indices = @transform_2, window_bounds = array<i64: 1, 32>}, {transform_indices = @transform_3, window_bounds = array<i64: 64, 32>}]} {
    %c0_i32 = arith.constant 0 : i32
    %0 = arith.cmpi eq, %arg2, %c0_i32 : i32
    %1 = arith.extui %0 : i1 to i32
    %c0_i32_0 = arith.constant 0 : i32
    %2 = arith.cmpi ne, %1, %c0_i32_0 : i32
    scf.if %2 {
      %cst_10 = arith.constant 0.000000e+00 : f32
      %13 = vector.broadcast %cst_10 : f32 to vector<64x32xf32>
      %c0_11 = arith.constant 0 : index
      %c0_12 = arith.constant 0 : index
      %14 = vector.load %arg7[%c0_11, %c0_12] : memref<64x32xf32, #tpu.memory_space<vmem>>, vector<64x32xf32>
      tpu.vector_store %arg7[%c0_11, %c0_12], %13 {strides = array<i32>} : memref<64x32xf32, #tpu.memory_space<vmem>>, vector<64x32xf32>,
    } else {
    }
    %c0 = arith.constant 0 : index
    %c0_1 = arith.constant 0 : index
    %3 = vector.load %arg7[%c0, %c0_1] : memref<64x32xf32, #tpu.memory_space<vmem>>, vector<64x32xf32>
    %c0_2 = arith.constant 0 : index
    %c0_3 = arith.constant 0 : index
    %4 = vector.load %arg3[%c0_2, %c0_3] : memref<64x24xf32, #tpu.memory_space<vmem>>, vector<64x24xf32>
    %5 = arith.truncf %4 : vector<64x24xf32> to vector<64x24xbf16>
    %c0_4 = arith.constant 0 : index
    %c0_5 = arith.constant 0 : index
    %6 = vector.load %arg4[%c0_4, %c0_5] : memref<24x32xbf16, #tpu.memory_space<vmem>>, vector<24x32xbf16>
    %cst = arith.constant dense<0.000000e+00> : vector<64x32xf32>
    %7 = tpu.matmul %5, %6, %cst {dimension_numbers = #tpu.dot_dimension_numbers<[1], [0], [0], [1], [0, 0, 1, 1], [], []>} : vector<64x24xbf16>, vector<24x32xbf16>, vector<64x32xf32> -> vector<64x32xf32>
    %8 = arith.addf %3, %7 : vector<64x32xf32>
    %c0_6 = arith.constant 0 : index
    %c0_7 = arith.constant 0 : index
    %9 = vector.load %arg7[%c0_6, %c0_7] : memref<64x32xf32, #tpu.memory_space<vmem>>, vector<64x32xf32>
    tpu.vector_store %arg7[%c0_6, %c0_7], %8 {strides = array<i32>} : memref<64x32xf32, #tpu.memory_space<vmem>>, vector<64x32xf32>,
    %c0_i32_8 = arith.constant 0 : i32
    %10 = arith.cmpi eq, %arg2, %c0_i32_8 : i32
    %11 = arith.extui %10 : i1 to i32
    %c0_i32_9 = arith.constant 0 : i32
    %12 = arith.cmpi ne, %11, %c0_i32_9 : i32
    scf.if %12 {
      %c0_10 = arith.constant 0 : index
      %c0_11 = arith.constant 0 : index
      %13 = vector.load %arg7[%c0_10, %c0_11] : memref<64x32xf32, #tpu.memory_space<vmem>>, vector<64x32xf32>
      %c0_12 = arith.constant 0 : index
      %c0_13 = arith.constant 0 : index
      %14 = vector.load %arg5[%c0_12, %c0_13] : memref<1x32xf32, #tpu.memory_space<vmem>>, vector<1x32xf32>
      %15 = vector.broadcast %14 : vector<1x32xf32> to vector<64x32xf32>
      %16 = arith.addf %13, %15 : vector<64x32xf32>
      %c0_14 = arith.constant 0 : index
      %c0_15 = arith.constant 0 : index
      %17 = vector.load %arg6[%c0_14, %c0_15] : memref<64x32xf32, #tpu.memory_space<vmem>>, vector<64x32xf32>
      tpu.vector_store %arg6[%c0_14, %c0_15], %16 {strides = array<i32>} : memref<64x32xf32, #tpu.memory_space<vmem>>, vector<64x32xf32>,
    } else {
    }
    return
  }
  func.func @transform_0(%arg0: i32, %arg1: i32, %arg2: i32) -> (i32, i32) {
    %c0_i32 = arith.constant 0 : i32
    return %arg0, %arg2 : i32, i32
  }
  func.func @transform_1(%arg0: i32, %arg1: i32, %arg2: i32) -> (i32, i32) {
    %c0_i32 = arith.constant 0 : i32
    return %arg2, %arg1 : i32, i32
  }
  func.func @transform_2(%arg0: i32, %arg1: i32, %arg2: i32) -> (i32, i32) {
    %c0_i32 = arith.constant 0 : i32
    %c0_i32_0 = arith.constant 0 : i32
    return %c0_i32, %arg1 : i32, i32
  }
  func.func @transform_3(%arg0: i32, %arg1: i32, %arg2: i32) -> (i32, i32) {
    %c0_i32 = arith.constant 0 : i32
    return %arg0, %arg1 : i32, i32
  }
}

</mosaic_0001>

<bundles_post_ra>
// kernel: tpu_custom_call.1
= control target key start
LH: loop header
LB: loop body
LE: loop exit
PB: predicated region body
PF: predicated region fallthrough
CT: control target
= control target key end

     0   :  { %8 = vsyncpa [#allocation4], 0  ;;  %s501_s0 = inlined_call_operand.hbm [shape: f32[64,24], index: 0, kind: input, shape index: {}]   ;;  %s502_s1 = inlined_call_operand.hbm [shape: bf16[24,32], index: 1, kind: input, shape index: {}]   ;;  %s503_s2 = inlined_call_operand.hbm [shape: f32[1,32], index: 2, kind: input, shape index: {}]   ;;  %s504_s3 = inlined_call_operand.hbm [shape: f32[64,32], index: 3, kind: output, shape index: {}]  }
   0x1   :  { %9 = vsyncpa [#allocation7], 0 }
   0x2   :  { %10 = vsyncpa [#allocation5], 0  ;;  %s387_s12 = smov [#allocation6]   ;;  %s293_s16 = scalar_lea.hbm %s502_s1, 192 }
   0x3   :  { %s28_s13 = sshll.u32 %s387_s12, 4  ;;  %p294_p0 = scmp.ne.s32.totalorder %s502_s1, %s293_s16  ;;  %s29_s13 = int_to_ptr.vmem [resolvable:$true] %s28_s13 }
   0x4   :  { %p297_p1 = scmp.lt.u32.totalorder %s293_s16, %s502_s1 }
   0x6   :  { %p299_p2 = pnand %p297_p1, %p294_p0 }
   0x8   :  { %302 = shalt.err (!%p299_p2)
}
   0x9   :  { %s303_s21 = scalar_lea.vmem %s29_s13, 192  ;;  %p308_p4 = scmp.lt.s32.totalorder %s29_s13, %s29_s13 }
   0xa   :  { %p304_p3 = scmp.ne.s32.totalorder %s29_s13, %s303_s21  ;;  %p309_p5 = scmp.lt.s32.totalorder %s303_s21, %s303_s21 }
   0xc   :  { %p310_p6 = por %p309_p5, %p308_p4 }
   0xe   :  { %p311_p7 = pnand %p310_p6, %p304_p3 }
  0x10   :  { %314 = shalt.err (!%p311_p7)
}
  0x11   :  { %s388_s22 = smov 64   ;;  %s389_s23 = smov 4  }
  0x12   :  { %34 = dma.hbm_to_vmem [thread:$0]  %s502_s1, 192, %s29_s13, [#allocation7], %s388_s22, %s388_s22, %s389_s23  }
  0x13   :  { %s390_s26 = smov [#allocation3]   ;;  %s315_s30 = scalar_lea.hbm %s501_s0, 1024 }
  0x14   :  { %s16_s27 = sshll.u32 %s390_s26, 4  ;;  %p316_p8 = scmp.ne.s32.totalorder %s501_s0, %s315_s30  ;;  %s17_s27 = int_to_ptr.vmem [resolvable:$true] %s16_s27 }
  0x15   :  { %p319_p9 = scmp.lt.u32.totalorder %s315_s30, %s501_s0 }
  0x17   :  { %p321_p10 = pnand %p319_p9, %p316_p8 }
  0x19   :  { %324 = shalt.err (!%p321_p10)
}
  0x1a   :  { %s325_s8 = scalar_lea.vmem %s17_s27, 1024  ;;  %p330_p12 = scmp.lt.s32.totalorder %s17_s27, %s17_s27 }
  0x1b   :  { %p326_p11 = scmp.ne.s32.totalorder %s17_s27, %s325_s8  ;;  %p331_p13 = scmp.lt.s32.totalorder %s325_s8, %s325_s8 }
  0x1d   :  { %p332_p0 = por %p331_p13, %p330_p12 }
  0x1f   :  { %p333_p1 = pnand %p332_p0, %p326_p11 }
  0x21   :  { %336 = shalt.err (!%p333_p1)
}
  0x22   :  { %s391_s1 = smov 128   ;;  %s392_s9 = smov 8  }
  0x23   :  { %22 = dma.hbm_to_vmem [thread:$0]  %s501_s0, 1024, %s17_s27, [#allocation4], %s391_s1, %s391_s1, %s392_s9  }
  0x24   :  { %s393_s12 = smov [#allocation8]   ;;  %s337_s16 = scalar_lea.hbm %s503_s2, 16 }
  0x25   :  { %s41_s13 = sshll.u32 %s393_s12, 4  ;;  %p338_p2 = scmp.ne.s32.totalorder %s503_s2, %s337_s16  ;;  %s42_s13 = int_to_ptr.vmem [resolvable:$true] %s41_s13 }
  0x26   :  { %p341_p3 = scmp.lt.u32.totalorder %s337_s16, %s503_s2 }
  0x28   :  { %p343_p4 = pnand %p341_p3, %p338_p2 }
  0x2a   :  { %346 = shalt.err (!%p343_p4)
}
  0x2b   :  { %s347_s21 = scalar_lea.vmem %s42_s13, 16  ;;  %s351_s0 = scalar_lea.vmem %s42_s13, 32 }
  0x2c   :  { %p348_p5 = scmp.ne.s32.totalorder %s42_s13, %s347_s21  ;;  %p352_p6 = scmp.lt.s32.totalorder %s42_s13, %s42_s13 }
  0x2d   :  { %p353_p7 = scmp.lt.s32.totalorder %s351_s0, %s347_s21 }
  0x2f   :  { %p354_p8 = por %p353_p7, %p352_p6 }
  0x31   :  { %p355_p9 = pnand %p354_p8, %p348_p5 }
  0x33   :  { %358 = shalt.err (!%p355_p9)
}
  0x34   :  { %44 = dma.hbm_to_vmem [thread:$0]  %s503_s2, 16, %s42_s13, [#allocation7]  }
  0x35   :  { %381 = dma.done.wait [#allocation4], 1024  }
  0x36   :  { %382 = vsyncadd [#allocation4], 4294966272 }
  0x37   :  { %383 = dma.done.wait [#allocation7], 208  }
  0x38   :  { %384 = vsyncadd [#allocation7], 4294967088  ;;  %vm59_vm0 = vcmask 261120   ;;  %v394_v0 = vmov 0.0   ;;  %v291_v1 = vld [vmem:[#allocation6] sm:$0xff]   ;;  %vm113_vm1 = vcmask 1043456  }
  0x39   :  { %62 = vst.msk [vmem:[#allocation2 + $0x10] sm:$0xff] %vm59_vm0, %v394_v0  ;;  %60 = vst.msk [vmem:[#allocation2] sm:$0xff] %vm59_vm0, %v394_v0  ;;  %v292_v2 = vld [vmem:[#allocation6 + $0x8] ss:$0 sps:$4 sm:$0xff]   ;;  %v76_v3 = vld [vmem:[#allocation3] sm:$0xff]  ;;  %264 = vmatprep.subr.bf16.mxu0 %v291_v1  ;;  %276 = vmatprep.subr.bf16.mxu1 %v291_v1  ;;  %vm100_vm2 = vcmask 195584  }
  0x3a   :  { %61 = vst.msk [vmem:[#allocation2 + $0x8] sm:$0xff] %vm59_vm0, %v394_v0  ;;  %63 = vst.msk [vmem:[#allocation2 + $0x18] sm:$0xff] %vm59_vm0, %v394_v0  ;;  %v77_v4 = vld [vmem:[#allocation3 + $0x8] sm:$0xff]  ;;  %v80_v5 = vld [vmem:[#allocation3 + $0x20] sm:$0xff]  ;;  %265 = vmatpush3.bf16.msra.mxu0 %v291_v1  ;;  %278 = vmatpush3.bf16.msra.mxu1 %v291_v1  ;;  %v115_v12 = vsel %vm113_vm1, %v292_v2, 0  ;;  %s395_s2 = smov [#allocation9]  }
  0x3b   :  { %64 = vst.msk [vmem:[#allocation2 + $0x20] sm:$0xff] %vm59_vm0, %v394_v0  ;;  %65 = vst.msk [vmem:[#allocation2 + $0x28] sm:$0xff] %vm59_vm0, %v394_v0  ;;  %v81_v6 = vld [vmem:[#allocation3 + $0x28] sm:$0xff]  ;;  %v84_v7 = vpack.c.bf16 %v77_v4, %v76_v3  ;;  %v78_v9 = vld [vmem:[#allocation3 + $0x10] sm:$0xff]  ;;  %280 = vmatprep.subr.msk.bf16.mxu0 %vm113_vm1, %v292_v2  ;;  %281 = vmatprep.subr.msk.bf16.mxu1 %vm113_vm1, %v292_v2  ;;  %s238_s24 = sshll.u32 %s395_s2, 4  ;;  %s239_s24 = int_to_ptr.vmem [resolvable:$true] %s238_s24 }
  0x3c   :  { %66 = vst.msk [vmem:[#allocation2 + $0x30] sm:$0xff] %vm59_vm0, %v394_v0  ;;  %67 = vst.msk [vmem:[#allocation2 + $0x38] sm:$0xff] %vm59_vm0, %v394_v0  ;;  %v86_v8 = vpack.c.bf16 %v81_v6, %v80_v5  ;;  %v79_v10 = vld [vmem:[#allocation3 + $0x18] sm:$0xff]  ;;  %v82_v11 = vld [vmem:[#allocation3 + $0x30] sm:$0xff]  ;;  %s359_s25 = scalar_lea.vmem %s239_s24, 1024  ;;  %p364_p11 = scmp.lt.s32.totalorder %s239_s24, %s239_s24 }
  0x3d   :  { %v83_v13 = vld [vmem:[#allocation3 + $0x38] sm:$0xff]  ;;  %268 = vmatprep.mubr.msk.bf16.mxu0 %vm100_vm2, %v84_v7  ;;  %v85_v14 = vpack.c.bf16 %v79_v10, %v78_v9  ;;  %v257_v40 = vld [vmem:[#allocation8] ss:$0 sm:$0xff]  ;;  %p360_p10 = scmp.ne.s32.totalorder %s239_s24, %s359_s25  ;;  %p365_p12 = scmp.lt.s32.totalorder %s359_s25, %s359_s25 }
  0x3e   :  { %272 = vmatprep.mubr.msk.bf16.mxu1 %vm100_vm2, %v86_v8  ;;  %v87_v15 = vpack.c.bf16 %v83_v13, %v82_v11  ;;  %267 = vmatpush3.bf16.msra.mxu0 %v115_v12 }
  0x3f   :  { %279 = vmatpush3.bf16.msra.mxu1 %v115_v12  ;;  %p366_p13 = por %p365_p12, %p364_p11 }
  0x40   :  { %v70_v16 = vld [vmem:[#allocation2 + $0x10] sm:$0xff]  ;;  %v68_v18 = vld [vmem:[#allocation2] sm:$0xff] }
  0x41   :  { %269 = vmatmul.mubr.msk.bf16.vlgmr.msra.gmra.mrb[0].mxu0 %vm100_vm2, %v85_v14  ;;  %v71_v22 = vld [vmem:[#allocation2 + $0x18] sm:$0xff]  ;;  %v69_v28 = vld [vmem:[#allocation2 + $0x8] sm:$0xff]  ;;  %p367_p0 = pnand %p366_p13, %p360_p10 }
  0x42   :  { %273 = vmatmul.mubr.msk.bf16.vlgmr.msra.gmra.mrb[0].mxu1 %vm100_vm2, %v87_v15  ;;  %v72_v19 = vld [vmem:[#allocation2 + $0x20] sm:$0xff]  ;;  %v73_v29 = vld [vmem:[#allocation2 + $0x28] sm:$0xff] }
  0x43   :  { %v74_v17 = vld [vmem:[#allocation2 + $0x30] sm:$0xff]  ;;  %v75_v23 = vld [vmem:[#allocation2 + $0x38] sm:$0xff] }
 0x114   :  { %v270_v20 = vpop.f32.mrb[0].mxu0 }
 0x115   :  { %v274_v21 = vpop.f32.mrb[0].mxu1  ;;  %v184_v24 = vadd.f32 %v270_v20, %v70_v16  ;;  %v151_v26 = vpop.f32.mrb[1].mxu0 }
 0x116   :  { %v188_v25 = vadd.f32 %v274_v21, %v74_v17  ;;  %v167_v27 = vpop.f32.mrb[1].mxu1  ;;  %v182_v30 = vadd.f32 %v151_v26, %v68_v18  ;;  %v271_v32 = vpop.f32.mrb[2].mxu0 }
 0x117   :  { %v186_v31 = vadd.f32 %v167_v27, %v72_v19  ;;  %v275_v33 = vpop.f32.mrb[2].mxu1  ;;  %193 = vst.msk [vmem:[#allocation2 + $0x10] sm:$0xff] %vm59_vm0, %v184_v24  ;;  %v185_v34 = vadd.f32 %v271_v32, %v71_v22  ;;  %v154_v36 = vpop.f32.mrb[3].mxu0 }
 0x118   :  { %197 = vst.msk [vmem:[#allocation2 + $0x30] sm:$0xff] %vm59_vm0, %v188_v25  ;;  %v189_v35 = vadd.f32 %v275_v33, %v75_v23  ;;  %v170_v37 = vpop.f32.mrb[3].mxu1  ;;  %191 = vst.msk [vmem:[#allocation2] sm:$0xff] %vm59_vm0, %v182_v30  ;;  %v183_v38 = vadd.f32 %v154_v36, %v69_v28 }
 0x119   :  { %195 = vst.msk [vmem:[#allocation2 + $0x20] sm:$0xff] %vm59_vm0, %v186_v31  ;;  %v187_v39 = vadd.f32 %v170_v37, %v73_v29  ;;  %194 = vst.msk [vmem:[#allocation2 + $0x18] sm:$0xff] %vm59_vm0, %v185_v34 }
 0x11a   :  { %198 = vst.msk [vmem:[#allocation2 + $0x38] sm:$0xff] %vm59_vm0, %v189_v35  ;;  %192 = vst.msk [vmem:[#allocation2 + $0x8] sm:$0xff] %vm59_vm0, %v183_v38 }
 0x11b   :  { %196 = vst.msk [vmem:[#allocation2 + $0x28] sm:$0xff] %vm59_vm0, %v187_v39 }
 0x11e   :  { %v204_v41 = vld [vmem:[#allocation2 + $0x10] sm:$0xff] }
 0x11f   :  { %v208_v42 = vld [vmem:[#allocation2 + $0x30] sm:$0xff]  ;;  %v202_v43 = vld [vmem:[#allocation2] sm:$0xff]  ;;  %v219_v45 = vadd.f32 %v257_v40, %v204_v41 }
 0x120   :  { %v206_v44 = vld [vmem:[#allocation2 + $0x20] sm:$0xff]  ;;  %v223_v46 = vadd.f32 %v257_v40, %v208_v42  ;;  %v205_v47 = vld [vmem:[#allocation2 + $0x18] sm:$0xff]  ;;  %v217_v49 = vadd.f32 %v257_v40, %v202_v43 }
 0x121   :  { %v209_v48 = vld [vmem:[#allocation2 + $0x38] sm:$0xff]  ;;  %v221_v50 = vadd.f32 %v257_v40, %v206_v44  ;;  %v203_v51 = vld [vmem:[#allocation2 + $0x8] sm:$0xff]  ;;  %v220_v53 = vadd.f32 %v257_v40, %v205_v47  ;;  %227 = vst.msk [vmem:[#allocation9 + $0x10] sm:$0xff] %vm59_vm0, %v219_v45 }
 0x122   :  { %v207_v52 = vld [vmem:[#allocation2 + $0x28] sm:$0xff]  ;;  %v224_v54 = vadd.f32 %v257_v40, %v209_v48  ;;  %231 = vst.msk [vmem:[#allocation9 + $0x30] sm:$0xff] %vm59_vm0, %v223_v46  ;;  %v218_v55 = vadd.f32 %v257_v40, %v203_v51  ;;  %225 = vst.msk [vmem:[#allocation9] sm:$0xff] %vm59_vm0, %v217_v49 }
 0x123   :  { %v222_v56 = vadd.f32 %v257_v40, %v207_v52  ;;  %229 = vst.msk [vmem:[#allocation9 + $0x20] sm:$0xff] %vm59_vm0, %v221_v50  ;;  %228 = vst.msk [vmem:[#allocation9 + $0x18] sm:$0xff] %vm59_vm0, %v220_v53 }
 0x124   :  { %232 = vst.msk [vmem:[#allocation9 + $0x38] sm:$0xff] %vm59_vm0, %v224_v54  ;;  %226 = vst.msk [vmem:[#allocation9 + $0x8] sm:$0xff] %vm59_vm0, %v218_v55 }
 0x125   :  { %230 = vst.msk [vmem:[#allocation9 + $0x28] sm:$0xff] %vm59_vm0, %v222_v56 }
 0x126   :  { %370 = shalt.err (!%p367_p0)
}
 0x127   :  { %s371_s28 = scalar_lea.hbm %s504_s3, 1024 }
 0x128   :  { %p372_p1 = scmp.ne.s32.totalorder %s504_s3, %s371_s28  ;;  %p375_p2 = scmp.lt.u32.totalorder %s371_s28, %s504_s3 }
 0x12a   :  { %p377_p3 = pnand %p375_p2, %p372_p1 }
 0x12c   :  { %380 = shalt.err (!%p377_p3)
}
 0x12d   :  { %244 = dma.vmem_to_hbm [thread:$0]  %s239_s24, 1024, %s504_s3, [#allocation5], %s391_s1, %s391_s1, %s392_s9  }
 0x12e   :  { %385 = dma.done.wait [#allocation5], 1024  }
 0x12f   :  { %386 = vsyncadd [#allocation5], 4294966272 }
 0x130   :  { %248 = vsyncpa [#allocation4], 1 }
 0x131   :  { %249 = vsyncpa [#allocation7], 1 }
 0x132   :  { %250 = vsyncpa [#allocation5], 1 }

</bundles_post_ra>
